<compile_context>
chip_gen: v5e
topology: v5e:2x2
jax: 0.10.0
libtpu: 0.0.40
codegen_flags: <defaults>
</compile_context>

<pallas_src>
import jax
import jax.numpy as jnp
from jax import lax
from jax.experimental import pallas as pl
from jax.experimental.pallas import tpu as pltpu

LANES = 128
ACC_SUBLANES = 8       # accumulator block = one f32 vreg: (8, 128)
MAX_TM = 1024          # rows per grid step (mem-bound: 512/1024/2048 all ~85%+ roofline)
NUM_SHARDS = 2         # outer "parallel" axis (v7x has 2 TensorCores per chip)


def _make_kernel(rows, tm, inner_steps):
    """rows: valid row count of the (rows, 128) slab; tm: rows per block."""
    last_full_block = rows // tm  # blocks [0, last_full_block) need no tail mask

    def kernel(pred_ref, w_ref, tgt_ref, num_ref, den_ref):
        i = pl.program_id(0)             # shard index (parallel axis)
        j = pl.program_id(1)             # reduction step (arbitrary axis)
        block = i * inner_steps + j      # logical row-block index

        @pl.when(j == 0)
        def _():
            num_ref[...] = jnp.zeros_like(num_ref)
            den_ref[...] = jnp.zeros_like(den_ref)

        def accumulate(masked):
            p = pred_ref[...].astype(jnp.float32)
            w = w_ref[...].astype(jnp.float32)
            t = tgt_ref[...].astype(jnp.float32)

            diff2 = (p - t) * (p - t)                    # (p - t)^2
            sum2 = (p + t) * (p + t)                     # (p + t)^2
            sum2 = jnp.where(sum2 == 0.0, jnp.float32(1e-7), sum2)
            # NOTE: on v7x, diff2 * pl.reciprocal(sum2, approx=True) keeps the
            # divide entirely on the EUP slot; exact division kept here to stay
            # within the 1e-5/1e-6 reference tolerance.
            val = (diff2 / sum2) * w

            if masked:
                row_ids = (lax.broadcasted_iota(jnp.int32, (tm, LANES), 0)
                           + block * tm)
                valid = row_ids < rows
                val = jnp.where(valid, val, 0.0)
                w = jnp.where(valid, w, 0.0)

            # Sublane-group reduce (tm,128) -> (8,128): pure vreg adds on the VPU.
            num_ref[...] += val.reshape(
                tm // ACC_SUBLANES, ACC_SUBLANES, LANES).sum(axis=0)
            den_ref[...] += w.reshape(
                tm // ACC_SUBLANES, ACC_SUBLANES, LANES).sum(axis=0)

        @pl.when(block < last_full_block)     # interior blocks: no masking cost
        def _():
            accumulate(masked=False)

        @pl.when(block >= last_full_block)    # edge / overflow blocks: masked
        def _():
            accumulate(masked=True)

    return kernel


def _scale_inv_depth_loss_impl(pred, weight, target):
    n = pred.size
    pred = pred.reshape(-1)
    weight = weight.reshape(-1)
    target = target.reshape(-1)

    # Pad only to the next lane multiple (<= 127 zeros). Zero padding is
    # neutral: w = 0 and diff2 = 0, so it contributes nothing to either sum.
    lane_pad = (-n) % LANES
    if lane_pad:
        pred = jnp.pad(pred, (0, lane_pad))
        weight = jnp.pad(weight, (0, lane_pad))
        target = jnp.pad(target, (0, lane_pad))
    rows = (n + lane_pad) // LANES

    # Tiny-input fallback: guarantee at least one full 8-row sublane group.
    if rows < ACC_SUBLANES:
        row_pad = ACC_SUBLANES - rows
        pred = jnp.pad(pred, (0, row_pad * LANES))
        weight = jnp.pad(weight, (0, row_pad * LANES))
        target = jnp.pad(target, (0, row_pad * LANES))
        rows = ACC_SUBLANES

    pred2d = pred.reshape(rows, LANES)
    weight2d = weight.reshape(rows, LANES)
    target2d = target.reshape(rows, LANES)

    # Rows per grid step: big (mem-bound), multiple of 8, never larger than the
    # array (ragged tail is masked in-kernel instead of padded in HBM).
    tm = min(MAX_TM, (rows // ACC_SUBLANES) * ACC_SUBLANES)
    nb = pl.cdiv(rows, tm)            # real row-blocks
    g = NUM_SHARDS                    # outer parallel shards
    s = pl.cdiv(nb, g)                # reduction steps per shard

    def in_map(i, j):
        # Clamp so overflow grid steps (i*s + j >= nb) still point at a valid
        # block; their contribution is zeroed by the in-kernel mask.
        return (jnp.minimum(i * s + j, nb - 1), 0)

    tile_spec = pl.BlockSpec((tm, LANES), in_map)
    acc_spec = pl.BlockSpec((ACC_SUBLANES, LANES), lambda i, j: (i, 0))

    num_part, den_part = pl.pallas_call(
        _make_kernel(rows, tm, s),
        out_shape=(
            jax.ShapeDtypeStruct((g * ACC_SUBLANES, LANES), jnp.float32),
            jax.ShapeDtypeStruct((g * ACC_SUBLANES, LANES), jnp.float32),
        ),
        grid_spec=pltpu.PrefetchScalarGridSpec(
            num_scalar_prefetch=0,
            grid=(g, s),
            in_specs=[tile_spec, tile_spec, tile_spec],
            out_specs=[acc_spec, acc_spec],
        ),
        compiler_params=pltpu.CompilerParams(
            dimension_semantics=("parallel", "arbitrary"),
        ),
    )(pred2d, weight2d, target2d)

    # Single cross-lane reduction + final divide, once per call (tiny).
    return jnp.sum(num_part) / jnp.sum(den_part)


scale_inv_depth_loss = jax.jit(_scale_inv_depth_loss_impl)


def _reference(pred, weight, target):
    p = jnp.asarray(pred, jnp.float32)
    w = jnp.asarray(weight, jnp.float32)
    t = jnp.asarray(target, jnp.float32)
    num = (p - t) ** 2
    den = (p + t) ** 2
    den = jnp.where(den == 0.0, 1e-7, den)
    return jnp.sum(num / den * w) / jnp.sum(w)


if __name__ == "__main__":
    key = jax.random.PRNGKey(0)
    k1, k2, k3 = jax.random.split(key, 3)
    B, C, H, W = 2, 4, 16, 16  # NCHW depth-map-like shapes
    pred = jax.random.uniform(k1, (B, C, H, W), jnp.float32, 0.1, 5.0)
    target = jax.random.uniform(k2, (B, C, H, W), jnp.float32, 0.1, 5.0)
    weight = jax.random.uniform(k3, (B, C, H, W), jnp.float32, 0.0, 1.0)

    loss = jax.block_until_ready(scale_inv_depth_loss(pred, weight, target))
    ref = _reference(pred, weight, target)
    assert jnp.allclose(loss, ref, rtol=1e-5, atol=1e-6), (loss, ref)

    # Ragged shape: exercises lane-padding + in-kernel tail masking path.
    k4, k5, k6 = jax.random.split(jax.random.PRNGKey(1), 3)
    shape2 = (2, 3, 15, 17)  # 1530 elements, not a multiple of 128
    pred2 = jax.random.uniform(k4, shape2, jnp.float32, 0.1, 5.0)
    target2 = jax.random.uniform(k5, shape2, jnp.float32, 0.1, 5.0)
    weight2 = jax.random.uniform(k6, shape2, jnp.float32, 0.0, 1.0)
    loss2 = jax.block_until_ready(scale_inv_depth_loss(pred2, weight2, target2))
    ref2 = _reference(pred2, weight2, target2)
    assert jnp.allclose(loss2, ref2, rtol=1e-5, atol=1e-6), (loss2, ref2)

    print("KERNEL_OK")
</pallas_src>

<mosaic_0001>
module attributes {stable_mosaic.version = 11 : i64} {
  func.func @kernel(%arg0: i32, %arg1: i32, %arg2: memref<16x128xf32, #tpu.memory_space<vmem>>, %arg3: memref<16x128xf32, #tpu.memory_space<vmem>>, %arg4: memref<16x128xf32, #tpu.memory_space<vmem>>, %arg5: memref<8x128xf32, #tpu.memory_space<vmem>>, %arg6: memref<8x128xf32, #tpu.memory_space<vmem>>) attributes {dimension_semantics = [#tpu.dimension_semantics<parallel>, #tpu.dimension_semantics<arbitrary>], iteration_bounds = array<i64: 2, 1>, scalar_prefetch = 0 : i64, scratch_operands = 0 : i64, tpu.core_type = #tpu.core_type<tc>, window_params = [{transform_indices = @transform_0, window_bounds = array<i64: 16, 128>}, {transform_indices = @transform_1, window_bounds = array<i64: 16, 128>}, {transform_indices = @transform_2, window_bounds = array<i64: 16, 128>}, {transform_indices = @transform_3, window_bounds = array<i64: 8, 128>}, {transform_indices = @transform_4, window_bounds = array<i64: 8, 128>}]} {
    %c1_i32 = arith.constant 1 : i32
    %0 = arith.muli %arg0, %c1_i32 : i32
    %1 = arith.addi %0, %arg1 : i32
    %c0_i32 = arith.constant 0 : i32
    %2 = arith.cmpi eq, %arg1, %c0_i32 : i32
    %3 = arith.extui %2 : i1 to i32
    %c0_i32_0 = arith.constant 0 : i32
    %4 = arith.cmpi ne, %3, %c0_i32_0 : i32
    scf.if %4 {
      %cst = arith.constant 0.000000e+00 : f32
      %11 = vector.broadcast %cst : f32 to vector<8x128xf32>
      %c0 = arith.constant 0 : index
      %c0_5 = arith.constant 0 : index
      %12 = vector.load %arg5[%c0, %c0_5] : memref<8x128xf32, #tpu.memory_space<vmem>>, vector<8x128xf32>
      tpu.vector_store %arg5[%c0, %c0_5], %11 {strides = array<i32>} : memref<8x128xf32, #tpu.memory_space<vmem>>, vector<8x128xf32>,
      %cst_6 = arith.constant 0.000000e+00 : f32
      %13 = vector.broadcast %cst_6 : f32 to vector<8x128xf32>
      %c0_7 = arith.constant 0 : index
      %c0_8 = arith.constant 0 : index
      %14 = vector.load %arg6[%c0_7, %c0_8] : memref<8x128xf32, #tpu.memory_space<vmem>>, vector<8x128xf32>
      tpu.vector_store %arg6[%c0_7, %c0_8], %13 {strides = array<i32>} : memref<8x128xf32, #tpu.memory_space<vmem>>, vector<8x128xf32>,
    } else {
    }
    %c1_i32_1 = arith.constant 1 : i32
    %5 = arith.cmpi slt, %1, %c1_i32_1 : i32
    %6 = arith.extui %5 : i1 to i32
    %c0_i32_2 = arith.constant 0 : i32
    %7 = arith.cmpi ne, %6, %c0_i32_2 : i32
    scf.if %7 {
      %c0 = arith.constant 0 : index
      %c0_5 = arith.constant 0 : index
      %11 = vector.load %arg2[%c0, %c0_5] : memref<16x128xf32, #tpu.memory_space<vmem>>, vector<16x128xf32>
      %c0_6 = arith.constant 0 : index
      %c0_7 = arith.constant 0 : index
      %12 = vector.load %arg3[%c0_6, %c0_7] : memref<16x128xf32, #tpu.memory_space<vmem>>, vector<16x128xf32>
      %c0_8 = arith.constant 0 : index
      %c0_9 = arith.constant 0 : index
      %13 = vector.load %arg4[%c0_8, %c0_9] : memref<16x128xf32, #tpu.memory_space<vmem>>, vector<16x128xf32>
      %14 = arith.subf %11, %13 : vector<16x128xf32>
      %15 = arith.subf %11, %13 : vector<16x128xf32>
      %16 = arith.mulf %14, %15 : vector<16x128xf32>
      %17 = arith.addf %11, %13 : vector<16x128xf32>
      %18 = arith.addf %11, %13 : vector<16x128xf32>
      %19 = arith.mulf %17, %18 : vector<16x128xf32>
      %cst = arith.constant 0.000000e+00 : f32
      %20 = vector.broadcast %cst : f32 to vector<16x128xf32>
      %21 = arith.cmpf oeq, %19, %20 : vector<16x128xf32>
      %cst_10 = arith.constant 1.000000e-07 : f32
      %22 = vector.broadcast %cst_10 : f32 to vector<16x128xf32>
      %23 = arith.select %21, %22, %19 : vector<16x128xi1>, vector<16x128xf32>
      %24 = arith.divf %16, %23 : vector<16x128xf32>
      %25 = arith.mulf %24, %12 : vector<16x128xf32>
      %c0_11 = arith.constant 0 : index
      %c0_12 = arith.constant 0 : index
      %26 = vector.load %arg5[%c0_11, %c0_12] : memref<8x128xf32, #tpu.memory_space<vmem>>, vector<8x128xf32>
      %27 = vector.shape_cast %25 : vector<16x128xf32> to vector<2x8x128xf32>
      %cst_13 = arith.constant dense<0.000000e+00> : vector<8x128xf32>
      %28 = vector.multi_reduction <add>, %27, %cst_13 [0] : vector<2x8x128xf32> to vector<8x128xf32>
      %29 = arith.addf %26, %28 : vector<8x128xf32>
      %c0_14 = arith.constant 0 : index
      %c0_15 = arith.constant 0 : index
      %30 = vector.load %arg5[%c0_14, %c0_15] : memref<8x128xf32, #tpu.memory_space<vmem>>, vector<8x128xf32>
      tpu.vector_store %arg5[%c0_14, %c0_15], %29 {strides = array<i32>} : memref<8x128xf32, #tpu.memory_space<vmem>>, vector<8x128xf32>,
      %c0_16 = arith.constant 0 : index
      %c0_17 = arith.constant 0 : index
      %31 = vector.load %arg6[%c0_16, %c0_17] : memref<8x128xf32, #tpu.memory_space<vmem>>, vector<8x128xf32>
      %32 = vector.shape_cast %12 : vector<16x128xf32> to vector<2x8x128xf32>
      %cst_18 = arith.constant dense<0.000000e+00> : vector<8x128xf32>
      %33 = vector.multi_reduction <add>, %32, %cst_18 [0] : vector<2x8x128xf32> to vector<8x128xf32>
      %34 = arith.addf %31, %33 : vector<8x128xf32>
      %c0_19 = arith.constant 0 : index
      %c0_20 = arith.constant 0 : index
      %35 = vector.load %arg6[%c0_19, %c0_20] : memref<8x128xf32, #tpu.memory_space<vmem>>, vector<8x128xf32>
      tpu.vector_store %arg6[%c0_19, %c0_20], %34 {strides = array<i32>} : memref<8x128xf32, #tpu.memory_space<vmem>>, vector<8x128xf32>,
    } else {
    }
    %c1_i32_3 = arith.constant 1 : i32
    %8 = arith.cmpi sge, %1, %c1_i32_3 : i32
    %9 = arith.extui %8 : i1 to i32
    %c0_i32_4 = arith.constant 0 : i32
    %10 = arith.cmpi ne, %9, %c0_i32_4 : i32
    scf.if %10 {
      %c0 = arith.constant 0 : index
      %c0_5 = arith.constant 0 : index
      %11 = vector.load %arg2[%c0, %c0_5] : memref<16x128xf32, #tpu.memory_space<vmem>>, vector<16x128xf32>
      %c0_6 = arith.constant 0 : index
      %c0_7 = arith.constant 0 : index
      %12 = vector.load %arg3[%c0_6, %c0_7] : memref<16x128xf32, #tpu.memory_space<vmem>>, vector<16x128xf32>
      %c0_8 = arith.constant 0 : index
      %c0_9 = arith.constant 0 : index
      %13 = vector.load %arg4[%c0_8, %c0_9] : memref<16x128xf32, #tpu.memory_space<vmem>>, vector<16x128xf32>
      %14 = arith.subf %11, %13 : vector<16x128xf32>
      %15 = arith.subf %11, %13 : vector<16x128xf32>
      %16 = arith.mulf %14, %15 : vector<16x128xf32>
      %17 = arith.addf %11, %13 : vector<16x128xf32>
      %18 = arith.addf %11, %13 : vector<16x128xf32>
      %19 = arith.mulf %17, %18 : vector<16x128xf32>
      %cst = arith.constant 0.000000e+00 : f32
      %20 = vector.broadcast %cst : f32 to vector<16x128xf32>
      %21 = arith.cmpf oeq, %19, %20 : vector<16x128xf32>
      %cst_10 = arith.constant 1.000000e-07 : f32
      %22 = vector.broadcast %cst_10 : f32 to vector<16x128xf32>
      %23 = arith.select %21, %22, %19 : vector<16x128xi1>, vector<16x128xf32>
      %24 = arith.divf %16, %23 : vector<16x128xf32>
      %25 = arith.mulf %24, %12 : vector<16x128xf32>
      %26 = tpu.iota {dimensions = array<i32: 0>} : vector<16x128xi32>
      %c16_i32 = arith.constant 16 : i32
      %27 = arith.muli %1, %c16_i32 : i32
      %28 = vector.broadcast %27 : i32 to vector<16x128xi32>
      %29 = arith.addi %26, %28 : vector<16x128xi32>
      %c16_i32_11 = arith.constant 16 : i32
      %30 = vector.broadcast %c16_i32_11 : i32 to vector<16x128xi32>
      %31 = arith.cmpi slt, %29, %30 : vector<16x128xi32>
      %cst_12 = arith.constant 0.000000e+00 : f32
      %32 = vector.broadcast %cst_12 : f32 to vector<16x128xf32>
      %33 = arith.select %31, %25, %32 : vector<16x128xi1>, vector<16x128xf32>
      %cst_13 = arith.constant 0.000000e+00 : f32
      %34 = vector.broadcast %cst_13 : f32 to vector<16x128xf32>
      %35 = arith.select %31, %12, %34 : vector<16x128xi1>, vector<16x128xf32>
      %c0_14 = arith.constant 0 : index
      %c0_15 = arith.constant 0 : index
      %36 = vector.load %arg5[%c0_14, %c0_15] : memref<8x128xf32, #tpu.memory_space<vmem>>, vector<8x128xf32>
      %37 = vector.shape_cast %33 : vector<16x128xf32> to vector<2x8x128xf32>
      %cst_16 = arith.constant dense<0.000000e+00> : vector<8x128xf32>
      %38 = vector.multi_reduction <add>, %37, %cst_16 [0] : vector<2x8x128xf32> to vector<8x128xf32>
      %39 = arith.addf %36, %38 : vector<8x128xf32>
      %c0_17 = arith.constant 0 : index
      %c0_18 = arith.constant 0 : index
      %40 = vector.load %arg5[%c0_17, %c0_18] : memref<8x128xf32, #tpu.memory_space<vmem>>, vector<8x128xf32>
      tpu.vector_store %arg5[%c0_17, %c0_18], %39 {strides = array<i32>} : memref<8x128xf32, #tpu.memory_space<vmem>>, vector<8x128xf32>,
      %c0_19 = arith.constant 0 : index
      %c0_20 = arith.constant 0 : index
      %41 = vector.load %arg6[%c0_19, %c0_20] : memref<8x128xf32, #tpu.memory_space<vmem>>, vector<8x128xf32>
      %42 = vector.shape_cast %35 : vector<16x128xf32> to vector<2x8x128xf32>
      %cst_21 = arith.constant dense<0.000000e+00> : vector<8x128xf32>
      %43 = vector.multi_reduction <add>, %42, %cst_21 [0] : vector<2x8x128xf32> to vector<8x128xf32>
      %44 = arith.addf %41, %43 : vector<8x128xf32>
      %c0_22 = arith.constant 0 : index
      %c0_23 = arith.constant 0 : index
      %45 = vector.load %arg6[%c0_22, %c0_23] : memref<8x128xf32, #tpu.memory_space<vmem>>, vector<8x128xf32>
      tpu.vector_store %arg6[%c0_22, %c0_23], %44 {strides = array<i32>} : memref<8x128xf32, #tpu.memory_space<vmem>>, vector<8x128xf32>,
    } else {
    }
    return
  }
  func.func @transform_0(%arg0: i32, %arg1: i32) -> (i32, i32) {
    %c1_i32 = arith.constant 1 : i32
    %0 = arith.muli %arg0, %c1_i32 : i32
    %1 = arith.addi %0, %arg1 : i32
    %c0_i32 = arith.constant 0 : i32
    %2 = arith.minsi %1, %c0_i32 : i32
    %c0_i32_0 = arith.constant 0 : i32
    %c0_i32_1 = arith.constant 0 : i32
    return %2, %c0_i32_0 : i32, i32
  }
  func.func @transform_1(%arg0: i32, %arg1: i32) -> (i32, i32) {
    %c1_i32 = arith.constant 1 : i32
    %0 = arith.muli %arg0, %c1_i32 : i32
    %1 = arith.addi %0, %arg1 : i32
    %c0_i32 = arith.constant 0 : i32
    %2 = arith.minsi %1, %c0_i32 : i32
    %c0_i32_0 = arith.constant 0 : i32
    %c0_i32_1 = arith.constant 0 : i32
    return %2, %c0_i32_0 : i32, i32
  }
  func.func @transform_2(%arg0: i32, %arg1: i32) -> (i32, i32) {
    %c1_i32 = arith.constant 1 : i32
    %0 = arith.muli %arg0, %c1_i32 : i32
    %1 = arith.addi %0, %arg1 : i32
    %c0_i32 = arith.constant 0 : i32
    %2 = arith.minsi %1, %c0_i32 : i32
    %c0_i32_0 = arith.constant 0 : i32
    %c0_i32_1 = arith.constant 0 : i32
    return %2, %c0_i32_0 : i32, i32
  }
  func.func @transform_3(%arg0: i32, %arg1: i32) -> (i32, i32) {
    %c0_i32 = arith.constant 0 : i32
    %c0_i32_0 = arith.constant 0 : i32
    return %arg0, %c0_i32 : i32, i32
  }
  func.func @transform_4(%arg0: i32, %arg1: i32) -> (i32, i32) {
    %c0_i32 = arith.constant 0 : i32
    %c0_i32_0 = arith.constant 0 : i32
    return %arg0, %c0_i32 : i32, i32
  }
}

</mosaic_0001>

<bundles_post_ra>
// kernel: _scale_inv_depth_loss_impl.1
= control target key start
LH: loop header
LB: loop body
LE: loop exit
PB: predicated region body
PF: predicated region fallthrough
CT: control target
= control target key end

     0   :  { %s689_s15 = smov 0   ;;  %s691_s16 = smov 0   ;;  %s779_s0 = inlined_call_operand.vmem [shape: f32[16,128], index: 0, kind: input, shape index: {}]   ;;  %s780_s1 = inlined_call_operand.vmem [shape: f32[16,128], index: 1, kind: input, shape index: {}]   ;;  %s781_s2 = inlined_call_operand.vmem [shape: f32[16,128], index: 2, kind: input, shape index: {}]   ;;  %s782_s3 = inlined_call_operand.vmem [shape: f32[16,128], index: 3, kind: output, shape index: {0}]   ;;  %s783_s4 = inlined_call_operand.vmem [shape: f32[16,128], index: 4, kind: output, shape index: {1}]  }
   0x1   :  { %s693_s17 = smov 0  }
   0x2 LB: > { %s27_s18 = sadd.s32 1, %s657_s16  ;;  %p592_p0 = scmp.ge.s32.totalorder %s661_s17, 1  ;;  %s661_s17 = sphi %s693_s17, %s15_s17   ;;  %s657_s16 = sphi %s691_s16, %s785_s16   ;;  %s653_s15 = sphi %s689_s15, %s784_s15  }
   0x3   : > { %p29_p1 = scmp.ge.s32.totalorder %s27_s18, 2  ;;  %p236_p2 = scmp.lt.s32.totalorder %s661_s17, 3 }
   0x5   : > { %s787_s18 = smov (%p29_p1, %s27_s18), 0  ;;  %p237_p3 = pnand %p592_p0, %p236_p2 }
   0x6   : > { %p285_p4 = scmp.lt.s32.totalorder (!%p237_p3), %s653_s15, 0  ;;  %p320_p5 = scmp.lt.s32.totalorder (!%p237_p3), %s653_s15, 1 }
   0x7   : > { %240 = sbr.rel (%p237_p3) target bundleno = 98 (0x62), region = 32  ;;  %p601_p7 = scmp.ge.s32.totalorder (!%p237_p3), %s653_s15, 1 }
   0xc   : > { %s286_s19 = scalar_select %p285_p4, %s653_s15, 0  ;;  %v663_v0 = vmov 0.0  }
   0xd   : > { %s321_s20 = scalar_select %p320_p5, %s653_s15, 1 }
   0xe   : > { %s593_s21 = sshll.u32 %s286_s19, 1 }
   0xf   : > { %p288_p6 = scmp.lt.s32.totalorder %s593_s21, 1  ;;  %s599_s22 = sshll.u32 %s321_s20, 3 }
  0x10   : > { %s718_s25 = scalar_lea.vmem %s782_s3, %s599_s22  ;;  %s723_s28 = scalar_lea.vmem %s783_s4, %s599_s22 }
  0x11   : > { %s789_s21 = smov (!%p288_p6, %s593_s21), 1  ;;  %333 = vst [vmem:[%s718_s25] sm:$0xff] %v663_v0  ;;  %338 = sbr.rel (%p601_p7) target bundleno = 57 (0x39), region = 40 }
  0x12   : > { %334 = vst [vmem:[%s723_s28] sm:$0xff] %v663_v0  ;;  %s594_s29 = sshll.u32 %s789_s21, 3 }
  0x13   : > { %s730_s6 = scalar_lea.vmem %s779_s0, %s594_s29  ;;  %s735_s9 = scalar_lea.vmem %s780_s1, %s594_s29 }
  0x14   : > { %s740_s12 = scalar_lea.vmem %s781_s2, %s594_s29 }
  0x16   : > { %v339_v1 = vld [vmem:[%s730_s6] sm:$0xff]  ;;  %v340_v2 = vld [vmem:[%s730_s6 + $0x8] sm:$0xff] }
  0x17   : > { %v343_v3 = vld [vmem:[%s740_s12] sm:$0xff]  ;;  %v344_v4 = vld [vmem:[%s740_s12 + $0x8] sm:$0xff] }
  0x18   : > { %v341_v5 = vld [vmem:[%s735_s9] sm:$0xff]  ;;  %v342_v6 = vld [vmem:[%s735_s9 + $0x8] sm:$0xff]  ;;  %v349_v7 = vadd.f32 %v343_v3, %v339_v1  ;;  %v350_v8 = vadd.f32 %v344_v4, %v340_v2  ;;  %v345_v18 = vsub.f32 %v339_v1, %v343_v3  ;;  %v346_v20 = vsub.f32 %v340_v2, %v344_v4 }
  0x19   : > { %v393_v9 = vld [vmem:[%s723_s28] sm:$0xff]  ;;  %v394_v10 = vadd.f32 %v342_v6, %v341_v5 }
  0x1a   : > { %v351_v11 = vmul.f32 %v349_v7, %v349_v7  ;;  %v352_v12 = vmul.f32 %v350_v8, %v350_v8  ;;  %v347_v31 = vmul.f32 %v345_v18, %v345_v18  ;;  %v348_v34 = vmul.f32 %v346_v20, %v346_v20  ;;  %v389_v44 = vld [vmem:[%s718_s25] sm:$0xff] }
  0x1b   : > { %v395_v13 = vadd.f32 %v394_v10, %v393_v9 }
  0x1c   : > { %vm353_vm0 = vcmp.eq.f32.partialorder %v351_v11, 0.0  ;;  %vm354_vm1 = vcmp.eq.f32.partialorder %v352_v12, 0.0 }
  0x1d   : > { %v355_v14 = vsel %vm353_vm0, 1e-07, %v351_v11  ;;  %v356_v15 = vsel %vm354_vm1, 1e-07, %v352_v12  ;;  %396 = vst [vmem:[%s723_s28] sm:$0xff] %v395_v13 }
  0x1e   : > { %631 = vrcp.f32 %v355_v14  ;;  %vm362_vm2 = vweird.f32 %v355_v14  ;;  %v368_v21 = vand.u32 2147483648, %v355_v14  ;;  %v366_v24 = vand.u32 2147483647, %v355_v14 }
  0x1f   : > { %633 = vrcp.f32 %v356_v15  ;;  %v383_v25 = vand.u32 2147483648, %v356_v15  ;;  %vm377_vm4 = vweird.f32 %v356_v15  ;;  %v381_v27 = vand.u32 2147483647, %v356_v15 }
  0x20   : > { %v369_v29 = vor.u32 1.1754944e-38, %v368_v21  ;;  %vm367_vm7 = vcmp.eq.f32.partialorder %v366_v24, 8.507059e+37 }
  0x21   : > { %v384_v33 = vor.u32 1.1754944e-38, %v383_v25  ;;  %vm382_vm9 = vcmp.eq.f32.partialorder %v381_v27, 8.507059e+37 }
  0x24   : > { %v632_v16 = vpop.eup %631 }
  0x25   : > { %v634_v17 = vpop.eup %633  ;;  %v358_v19 = vmul.f32 %v632_v16, %v355_v14  ;;  %vm363_vm3 = vweird.f32 %v632_v16 }
  0x26   : > { %v373_v22 = vmul.f32 %v634_v17, %v356_v15  ;;  %vm378_vm5 = vweird.f32 %v634_v17  ;;  %vm364_vm6 = vmor %vm362_vm2, %vm363_vm3 }
  0x27   : > { %v359_v23 = vsub.f32 1.0, %v358_v19  ;;  %vm379_vm8 = vmor %vm377_vm4, %vm378_vm5 }
  0x28   : > { %v374_v26 = vsub.f32 1.0, %v373_v22 }
  0x29   : > { %v360_v28 = vmul.f32 %v632_v16, %v359_v23 }
  0x2a   : > { %v375_v30 = vmul.f32 %v634_v17, %v374_v26 }
  0x2b   : > { %v361_v32 = vadd.f32 %v632_v16, %v360_v28 }
  0x2c   : > { %v376_v35 = vadd.f32 %v634_v17, %v375_v30 }
  0x2d   : > { %v365_v36 = vsel %vm364_vm6, %v632_v16, %v361_v32 }
  0x2e   : > { %v370_v37 = vsel %vm367_vm7, %v369_v29, %v365_v36  ;;  %v380_v38 = vsel %vm379_vm8, %v634_v17, %v376_v35 }
  0x2f   : > { %v371_v39 = vmul.f32 %v370_v37, %v347_v31  ;;  %v385_v40 = vsel %vm382_vm9, %v384_v33, %v380_v38 }
  0x30   : > { %v386_v41 = vmul.f32 %v385_v40, %v348_v34 }
  0x31   : > { %v387_v42 = vmul.f32 %v371_v39, %v341_v5 }
  0x32   : > { %v388_v43 = vmul.f32 %v386_v41, %v342_v6 }
  0x34   : > { %v390_v45 = vadd.f32 %v388_v43, %v387_v42 }
  0x36   : > { %v391_v46 = vadd.f32 %v390_v45, %v389_v44 }
  0x38   : > { %392 = vst [vmem:[%s718_s25] sm:$0xff] %v391_v46 }
  0x39 PF: > { %400 = sbr.rel (%p320_p5) target bundleno = 98 (0x62), region = 44  ;;  %s603_s13 = sshll.u32 (!%p320_p5), %s653_s15, 4 }
  0x3e   : > { %v401_v47 = vld [vmem:[%s730_s6] sm:$0xff]  ;;  %v402_v48 = vld [vmem:[%s730_s6 + $0x8] sm:$0xff]  ;;  %v451_v49 = vlaneseq  ;;  %v455_v54 = vstv %s603_s13 }
  0x3f   : > { %v405_v50 = vld [vmem:[%s740_s12] sm:$0xff]  ;;  %v406_v51 = vld [vmem:[%s740_s12 + $0x8] sm:$0xff] }
  0x40   : > { %v411_v52 = vadd.f32 %v405_v50, %v401_v47  ;;  %v412_v53 = vadd.f32 %v406_v51, %v402_v48  ;;  %v452_v55 = vshrl.u32 %v451_v49, 7  ;;  %v403_v63 = vld [vmem:[%s735_s9] sm:$0xff]  ;;  %v404_v0 = vld [vmem:[%s735_s9 + $0x8] sm:$0xff]  ;;  %v407_v8 = vsub.f32 %v401_v47, %v405_v50 }
  0x41   : > { %v468_v3 = vld [vmem:[%s723_s28] sm:$0xff]  ;;  %v408_v10 = vsub.f32 %v402_v48, %v406_v51 }
  0x42   : > { %v413_v56 = vmul.f32 %v411_v52, %v411_v52  ;;  %v414_v57 = vmul.f32 %v412_v53, %v412_v53  ;;  %v453_v58 = vadd.s32 8, %v452_v55  ;;  %v456_v59 = vadd.s32 %v455_v54, %v452_v55  ;;  %v464_v36 = vld [vmem:[%s718_s25] sm:$0xff] }
  0x43   : > { %v409_v21 = vmul.f32 %v407_v8, %v407_v8  ;;  %v410_v24 = vmul.f32 %v408_v10, %v408_v10 }
  0x44   : > { %vm415_vm10 = vcmp.eq.f32.partialorder %v413_v56, 0.0  ;;  %vm416_vm11 = vcmp.eq.f32.partialorder %v414_v57, 0.0  ;;  %v457_v62 = vadd.s32 %v455_v54, %v453_v58  ;;  %vm458_vm12 = vcmp.lt.s32.totalorder %v456_v59, 16 }
  0x45   : > { %v417_v60 = vsel %vm415_vm10, 1e-07, %v413_v56  ;;  %v418_v61 = vsel %vm416_vm11, 1e-07, %v414_v57  ;;  %v462_v1 = vsel %vm458_vm12, %v403_v63, 0.0 }
  0x46   : > { %635 = vrcp.f32 %v417_v60  ;;  %vm459_vm13 = vcmp.lt.s32.totalorder %v457_v62, 16  ;;  %vm424_vm14 = vweird.f32 %v417_v60  ;;  %v430_v11 = vand.u32 2147483648, %v417_v60 }
  0x47   : > { %637 = vrcp.f32 %v418_v61  ;;  %v463_v2 = vsel %vm459_vm13, %v404_v0, 0.0  ;;  %v428_v14 = vand.u32 2147483647, %v417_v60  ;;  %v445_v15 = vand.u32 2147483648, %v418_v61 }
  0x48   : > { %v469_v4 = vadd.f32 %v463_v2, %v462_v1  ;;  %vm439_vm0 = vweird.f32 %v418_v61  ;;  %v443_v17 = vand.u32 2147483647, %v418_v61  ;;  %v431_v19 = vor.u32 1.1754944e-38, %v430_v11 }
  0x49   : > { %vm429_vm3 = vcmp.eq.f32.partialorder %v428_v14, 8.507059e+37  ;;  %v446_v23 = vor.u32 1.1754944e-38, %v445_v15 }
  0x4a   : > { %v470_v6 = vadd.f32 %v469_v4, %v468_v3  ;;  %vm444_vm5 = vcmp.eq.f32.partialorder %v443_v17, 8.507059e+37 }
  0x4c   : > { %v636_v5 = vpop.eup %635  ;;  %471 = vst [vmem:[%s723_s28] sm:$0xff] %v470_v6 }
  0x4d   : > { %v638_v7 = vpop.eup %637  ;;  %v420_v9 = vmul.f32 %v636_v5, %v417_v60  ;;  %vm425_vm15 = vweird.f32 %v636_v5 }
  0x4e   : > { %v435_v12 = vmul.f32 %v638_v7, %v418_v61  ;;  %vm440_vm1 = vweird.f32 %v638_v7  ;;  %vm426_vm2 = vmor %vm424_vm14, %vm425_vm15 }
  0x4f   : > { %v421_v13 = vsub.f32 1.0, %v420_v9  ;;  %vm441_vm4 = vmor %vm439_vm0, %vm440_vm1 }
  0x50   : > { %v436_v16 = vsub.f32 1.0, %v435_v12 }
  0x51   : > { %v422_v18 = vmul.f32 %v636_v5, %v421_v13 }
  0x52   : > { %v437_v20 = vmul.f32 %v638_v7, %v436_v16 }
  0x53   : > { %v423_v22 = vadd.f32 %v636_v5, %v422_v18 }
  0x54   : > { %v438_v25 = vadd.f32 %v638_v7, %v437_v20 }
  0x55   : > { %v427_v26 = vsel %vm426_vm2, %v636_v5, %v423_v22 }
  0x56   : > { %v432_v27 = vsel %vm429_vm3, %v431_v19, %v427_v26  ;;  %v442_v28 = vsel %vm441_vm4, %v638_v7, %v438_v25 }
  0x57   : > { %v433_v29 = vmul.f32 %v432_v27, %v409_v21  ;;  %v447_v30 = vsel %vm444_vm5, %v446_v23, %v442_v28 }
  0x58   : > { %v448_v31 = vmul.f32 %v447_v30, %v410_v24 }
  0x59   : > { %v449_v32 = vmul.f32 %v433_v29, %v403_v63 }
  0x5a   : > { %v450_v33 = vmul.f32 %v448_v31, %v404_v0 }
  0x5b   : > { %v460_v34 = vsel %vm458_vm12, %v449_v32, 0.0 }
  0x5c   : > { %v461_v35 = vsel %vm459_vm13, %v450_v33, 0.0 }
  0x5d   : > { %v465_v37 = vadd.f32 %v461_v35, %v460_v34 }
  0x5f   : > { %v466_v38 = vadd.f32 %v465_v37, %v464_v36 }
  0x61   : > { %467 = vst [vmem:[%s718_s25] sm:$0xff] %v466_v38 }
  0x62 PF: > { %s15_s17 = sadd.s32 1, %s661_s17   ;;  %s784_s15 = smov %s657_s16 }
  0x63   : > { %p12_p8 = scmp.ge.s32.totalorder %s15_s17, 4   ;;  %s785_s16 = smov %s787_s18 }
  0x65   :  { %14 = sbr.rel (!%p12_p8) target bundleno = 2 (0x2), region = 92 }

</bundles_post_ra>
